<compile_context>
chip_gen: v7x
topology: tpu7x:2x2x1
jax: 0.10.0
libtpu: 0.0.40
codegen_flags: <defaults>
</compile_context>

<pallas_src>
import jax
import jax.numpy as jnp
from jax.experimental import pallas as pl
from jax.experimental.pallas import tpu as pltpu


def _transition_kernel(scale_ref, bias_ref, w_ref, x_ref, o_ref):
    """BN(affine) + ReLU -> 2x2 avg-pool -> 1x1 conv for one (batch, Hp-tile).

    Per-grid-step ref shapes:
      scale_ref: (1, 2*Cin)                 f32   (grid-resident)
      bias_ref : (1, 2*Cin)                 f32   (grid-resident)
      w_ref    : (2*Cin, Cout_pad)          bf16  (grid-resident, [w;w] * 0.25)
      x_ref    : (1, tile_hp, 2, Wp, 2*Cin) bf16/f32
      o_ref    : (1, tile_hp*Wp, Cout_pad)  lane-dense output
    """
    _, th, _, wp, c2 = x_ref.shape

    # Single fused BN-affine + ReLU pass over the whole block, f32 on the VPU
    # (v5e has no bf16 VALU).
    x = x_ref[0].astype(jnp.float32)                         # (th, 2, Wp, 2C)
    y = jnp.maximum(x * scale_ref[...] + bias_ref[...], 0.0)

    # 2x2 pool, step 1: sum the H-parity plane (one VPU add).
    s = y[:, 0, :, :] + y[:, 1, :, :]                        # (th, Wp, 2C)

    # 2x2 pool, step 2 + 1x1 conv: the W-parity fold and the 0.25 pool
    # normalization live in the stacked weight, so a single MXU matmul
    # finishes the job (bf16 operands, f32 accumulation).
    lhs = s.reshape(th * wp, c2).astype(jnp.bfloat16)
    out = jnp.dot(lhs, w_ref[...], preferred_element_type=jnp.float32)
    o_ref[0] = out.astype(o_ref.dtype)


def _pick_tile_hp(hp, wp, c2, cout_pad, in_itemsize, out_itemsize,
                  budget_bytes=20 << 20):
    """Largest legal Hp tile whose double-buffered footprint fits the budget."""
    resident = c2 * cout_pad * 2 + 2 * c2 * 4        # weight(bf16) + scale/bias

    def footprint(t):
        in_b = t * 2 * wp * c2 * in_itemsize
        out_b = t * wp * cout_pad * out_itemsize
        return 2 * (in_b + out_b) + resident         # x2: double-buffering

    # Legal tiles: the full Hp, or divisors of Hp with tile*Wp a sublane
    # multiple of 8 (keeps the output block's second-to-last dim legal and the
    # in-kernel (tile*Wp, 2*Cin) flatten layout-trivial).
    candidates = [hp] + [t for t in range(hp - 1, 0, -1)
                         if hp % t == 0 and (t * wp) % 8 == 0]
    for t in candidates:
        if footprint(t) <= budget_bytes:
            return t, footprint(t)
    t = candidates[-1]                               # best effort
    return t, footprint(t)


def transition_block_nhwc(x_nhwc, bn_scale, bn_bias, w_io, out_dtype=None):
    """Fused TransitionBlock on channels-last input.

    x_nhwc : (N, H, W, Cin)  f32 or bf16 (bf16 recommended: kernel is HBM-bound)
    bn_scale, bn_bias : (Cin,) folded BatchNorm affine
    w_io   : (Cin, Cout) 1x1-conv weight (bias-free, as in the module)
    returns (N, H//2, W//2, Cout) in out_dtype (default: x dtype)
    """
    n, h, w, c = x_nhwc.shape
    if h % 2 or w % 2:
        raise ValueError("H and W must be even (avg_pool2d kernel=stride=2).")
    cout = w_io.shape[1]
    out_dtype = jnp.dtype(x_nhwc.dtype if out_dtype is None else out_dtype)
    hp, wp = h // 2, w // 2
    c2 = 2 * c
    cout_pad = -(-cout // 128) * 128     # lane-dense output -> unmasked stores

    # Free row-major metadata reshape: (N,H,W,C) -> (N,Hp,2,Wp,2*C); the
    # W-parity pair lands on the lane axis.
    x6 = x_nhwc.reshape(n, hp, 2, wp, c2)

    # BN scale/bias tiled to 2*Cin: one fused BN+ReLU pass in the kernel.
    scale2 = jnp.tile(bn_scale.astype(jnp.float32), 2).reshape(1, c2)
    bias2 = jnp.tile(bn_bias.astype(jnp.float32), 2).reshape(1, c2)

    # Stack [w; w] along K (W-parity pool fold) and fold the exact 0.25 pool
    # normalization into the weight; pad Cout to a lane multiple.
    w2 = jnp.concatenate([w_io, w_io], axis=0).astype(jnp.float32) * 0.25
    if cout_pad != cout:
        w2 = jnp.pad(w2, ((0, 0), (0, cout_pad - cout)))
    w2 = w2.astype(jnp.bfloat16)

    tile_hp, fp_bytes = _pick_tile_hp(
        hp, wp, c2, cout_pad,
        in_itemsize=x6.dtype.itemsize, out_itemsize=out_dtype.itemsize)
    grid = (n, hp // tile_hp)

    # Cover the double-buffered blocks with headroom; stay well under v7x's
    # 64 MiB physical VMEM.
    vmem_limit = int(min(max(fp_bytes + (8 << 20), 16 << 20), 48 << 20))

    cost = pl.CostEstimate(
        flops=2 * n * hp * wp * c2 * cout_pad + 4 * n * h * w * c,
        transcendentals=0,
        bytes_accessed=(x6.size * x6.dtype.itemsize + w2.size * 2 + 2 * c2 * 4
                        + n * hp * wp * cout_pad * out_dtype.itemsize),
    )

    out_flat = pl.pallas_call(
        _transition_kernel,
        out_shape=jax.ShapeDtypeStruct((n, hp * wp, cout_pad), out_dtype),
        grid=grid,
        in_specs=[
            pl.BlockSpec((1, c2), lambda b, t: (0, 0)),           # scale (resident)
            pl.BlockSpec((1, c2), lambda b, t: (0, 0)),           # bias  (resident)
            pl.BlockSpec((c2, cout_pad), lambda b, t: (0, 0)),    # weight (resident)
            pl.BlockSpec((1, tile_hp, 2, wp, c2),
                         lambda b, t: (b, t, 0, 0, 0)),           # x tile
        ],
        out_specs=pl.BlockSpec((1, tile_hp * wp, cout_pad),
                               lambda b, t: (b, t, 0)),
        compiler_params=pltpu.CompilerParams(
            # Both axes parallel: v7x keeps both TensorCores busy even at N==1.
            dimension_semantics=("parallel", "parallel"),
            vmem_limit_bytes=vmem_limit,
        ),
        cost_estimate=cost,
    )(scale2, bias2, w2, x6)

    out = out_flat if cout_pad == cout else out_flat[..., :cout]
    return out.reshape(n, hp, wp, cout)


def transition_block_forward(x_nchw, gamma, beta, running_mean, running_var,
                             conv_w, eps=1e-5, compute_dtype=jnp.bfloat16):
    """Drop-in NCHW forward matching the PyTorch module (eval mode).

    For best performance keep the surrounding model channels-last (and bf16)
    and call transition_block_nhwc directly, avoiding both layout transposes.
    """
    # Fold BatchNorm (running stats) into a per-channel affine.
    scale = gamma * jax.lax.rsqrt(running_var + eps)
    bias = beta - running_mean * scale

    # Pool/conv commutation in the kernel is exact only because the 1x1 conv
    # is bias-free (nn.Conv2d(..., bias=False) in the module).
    assert conv_w.ndim == 4 and conv_w.shape[2] == 1 and conv_w.shape[3] == 1
    cout, cin = conv_w.shape[0], conv_w.shape[1]
    w_io = conv_w.reshape(cout, cin).T            # (Cin, Cout)

    # Layout change + bf16 cast fuse into one XLA pass: halves the dominant
    # HBM stream the kernel reads (kernel upcasts to f32 for all VPU math).
    x_nhwc = jnp.transpose(x_nchw, (0, 2, 3, 1)).astype(compute_dtype)
    out_nhwc = transition_block_nhwc(x_nhwc, scale, bias, w_io,
                                     out_dtype=x_nchw.dtype)
    return jnp.transpose(out_nhwc, (0, 3, 1, 2))


def _reference_forward(x_nchw, gamma, beta, running_mean, running_var,
                       conv_w, eps=1e-5):
    """Pure-JAX f32 reference of the PyTorch module (eval mode)."""
    scale = gamma / jnp.sqrt(running_var + eps)
    bias = beta - running_mean * scale
    y = jnp.maximum(
        x_nchw * scale[None, :, None, None] + bias[None, :, None, None], 0.0)
    w2d = conv_w.reshape(conv_w.shape[0], conv_w.shape[1])
    out = jnp.einsum("nchw,oc->nohw", y, w2d)
    n, co, h, w = out.shape
    return out.reshape(n, co, h // 2, 2, w // 2, 2).mean(axis=(3, 5))


if __name__ == "__main__":
    key = jax.random.PRNGKey(0)
    kx, kg, kb, km, kv, kw = jax.random.split(key, 6)

    N, CIN, H, W = 2, 4, 16, 16
    COUT = 8

    x = jax.random.normal(kx, (N, CIN, H, W), dtype=jnp.float32)
    gamma = 1.0 + 0.1 * jax.random.normal(kg, (CIN,), dtype=jnp.float32)
    beta = 0.1 * jax.random.normal(kb, (CIN,), dtype=jnp.float32)
    running_mean = 0.1 * jax.random.normal(km, (CIN,), dtype=jnp.float32)
    running_var = jax.random.uniform(kv, (CIN,), dtype=jnp.float32,
                                     minval=0.5, maxval=1.5)
    conv_w = 0.5 * jax.random.normal(kw, (COUT, CIN, 1, 1), dtype=jnp.float32)

    fwd = jax.jit(transition_block_forward)
    out = jax.block_until_ready(fwd(x, gamma, beta, running_mean,
                                    running_var, conv_w))

    ref = _reference_forward(x, gamma, beta, running_mean, running_var, conv_w)
    assert out.shape == (N, COUT, H // 2, W // 2), out.shape
    max_err = float(jnp.max(jnp.abs(out - ref)))
    # bf16 input stream + bf16 MXU operands with f32 accumulation.
    assert jnp.allclose(out, ref, rtol=5e-2, atol=5e-2), f"max abs err = {max_err}"
    print("KERNEL_OK")
</pallas_src>

<mosaic_0001>
module attributes {stable_mosaic.version = 11 : i64} {
  func.func @_transition_kernel(%arg0: i32, %arg1: i32, %arg2: memref<1x8xf32, #tpu.memory_space<vmem>>, %arg3: memref<1x8xf32, #tpu.memory_space<vmem>>, %arg4: memref<8x128xbf16, #tpu.memory_space<vmem>>, %arg5: memref<1x8x2x8x8xbf16, #tpu.memory_space<vmem>>, %arg6: memref<1x64x128xf32, #tpu.memory_space<vmem>>) attributes {dimension_semantics = [#tpu.dimension_semantics<parallel>, #tpu.dimension_semantics<parallel>], iteration_bounds = array<i64: 2, 1>, scalar_prefetch = 0 : i64, scratch_operands = 0 : i64, tpu.core_type = #tpu.core_type<tc>, window_params = [{pipeline_mode = #tpu.pipeline_mode<synchronous>, transform_indices = @transform_0, window_bounds = array<i64: 1, 8>}, {pipeline_mode = #tpu.pipeline_mode<synchronous>, transform_indices = @transform_1, window_bounds = array<i64: 1, 8>}, {pipeline_mode = #tpu.pipeline_mode<synchronous>, transform_indices = @transform_2, window_bounds = array<i64: 8, 128>}, {transform_indices = @transform_3, window_bounds = array<i64: 1, 8, 2, 8, 8>}, {transform_indices = @transform_4, window_bounds = array<i64: 1, 64, 128>}]} {
    %c0 = arith.constant 0 : index
    %c0_0 = arith.constant 0 : index
    %c0_1 = arith.constant 0 : index
    %c0_2 = arith.constant 0 : index
    %c0_3 = arith.constant 0 : index
    %0 = vector.load %arg5[%c0, %c0_0, %c0_1, %c0_2, %c0_3] : memref<1x8x2x8x8xbf16, #tpu.memory_space<vmem>>, vector<1x8x2x8x8xbf16>
    %1 = vector.shape_cast %0 : vector<1x8x2x8x8xbf16> to vector<8x2x8x8xbf16>
    %2 = arith.extf %1 : vector<8x2x8x8xbf16> to vector<8x2x8x8xf32>
    %c0_4 = arith.constant 0 : index
    %c0_5 = arith.constant 0 : index
    %3 = vector.load %arg2[%c0_4, %c0_5] : memref<1x8xf32, #tpu.memory_space<vmem>>, vector<1x8xf32>
    %4 = vector.shape_cast %3 : vector<1x8xf32> to vector<1x1x1x8xf32>
    %5 = vector.broadcast %4 : vector<1x1x1x8xf32> to vector<8x2x8x8xf32>
    %6 = arith.mulf %2, %5 : vector<8x2x8x8xf32>
    %c0_6 = arith.constant 0 : index
    %c0_7 = arith.constant 0 : index
    %7 = vector.load %arg3[%c0_6, %c0_7] : memref<1x8xf32, #tpu.memory_space<vmem>>, vector<1x8xf32>
    %8 = vector.shape_cast %7 : vector<1x8xf32> to vector<1x1x1x8xf32>
    %9 = vector.broadcast %8 : vector<1x1x1x8xf32> to vector<8x2x8x8xf32>
    %10 = arith.addf %6, %9 : vector<8x2x8x8xf32>
    %cst = arith.constant 0.000000e+00 : f32
    %11 = vector.broadcast %cst : f32 to vector<8x2x8x8xf32>
    %12 = arith.maximumf %10, %11 : vector<8x2x8x8xf32>
    %13 = vector.extract_strided_slice %12 {offsets = [0, 0, 0, 0], sizes = [8, 1, 8, 8], strides = [1, 1, 1, 1]} : vector<8x2x8x8xf32> to vector<8x1x8x8xf32>
    %14 = vector.shape_cast %13 : vector<8x1x8x8xf32> to vector<8x8x8xf32>
    %15 = vector.extract_strided_slice %12 {offsets = [0, 1, 0, 0], sizes = [8, 1, 8, 8], strides = [1, 1, 1, 1]} : vector<8x2x8x8xf32> to vector<8x1x8x8xf32>
    %16 = vector.shape_cast %15 : vector<8x1x8x8xf32> to vector<8x8x8xf32>
    %17 = arith.addf %14, %16 : vector<8x8x8xf32>
    %18 = vector.shape_cast %17 : vector<8x8x8xf32> to vector<64x8xf32>
    %19 = arith.truncf %18 : vector<64x8xf32> to vector<64x8xbf16>
    %c0_8 = arith.constant 0 : index
    %c0_9 = arith.constant 0 : index
    %20 = vector.load %arg4[%c0_8, %c0_9] : memref<8x128xbf16, #tpu.memory_space<vmem>>, vector<8x128xbf16>
    %cst_10 = arith.constant dense<0.000000e+00> : vector<64x128xf32>
    %21 = tpu.matmul %19, %20, %cst_10 {dimension_numbers = #tpu.dot_dimension_numbers<[1], [0], [0], [1], [0, 0, 1, 1], [], []>} : vector<64x8xbf16>, vector<8x128xbf16>, vector<64x128xf32> -> vector<64x128xf32>
    %c0_11 = arith.constant 0 : index
    %c0_12 = arith.constant 0 : index
    %c0_13 = arith.constant 0 : index
    %22 = vector.load %arg6[%c0_11, %c0_12, %c0_13] : memref<1x64x128xf32, #tpu.memory_space<vmem>>, vector<1x64x128xf32>
    %23 = vector.shape_cast %22 : vector<1x64x128xf32> to vector<64x128xf32>
    %24 = vector.shape_cast %21 : vector<64x128xf32> to vector<1x64x128xf32>
    tpu.vector_store %arg6[%c0_11, %c0_12, %c0_13], %24 {strides = array<i32>} : memref<1x64x128xf32, #tpu.memory_space<vmem>>, vector<1x64x128xf32>,
    return
  }
  func.func @transform_0(%arg0: i32, %arg1: i32) -> (i32, i32) {
    %c0_i32 = arith.constant 0 : i32
    %c0_i32_0 = arith.constant 0 : i32
    %c0_i32_1 = arith.constant 0 : i32
    return %c0_i32, %c0_i32_0 : i32, i32
  }
  func.func @transform_1(%arg0: i32, %arg1: i32) -> (i32, i32) {
    %c0_i32 = arith.constant 0 : i32
    %c0_i32_0 = arith.constant 0 : i32
    %c0_i32_1 = arith.constant 0 : i32
    return %c0_i32, %c0_i32_0 : i32, i32
  }
  func.func @transform_2(%arg0: i32, %arg1: i32) -> (i32, i32) {
    %c0_i32 = arith.constant 0 : i32
    %c0_i32_0 = arith.constant 0 : i32
    %c0_i32_1 = arith.constant 0 : i32
    return %c0_i32, %c0_i32_0 : i32, i32
  }
  func.func @transform_3(%arg0: i32, %arg1: i32) -> (i32, i32, i32, i32, i32) {
    %c0_i32 = arith.constant 0 : i32
    %c0_i32_0 = arith.constant 0 : i32
    %c0_i32_1 = arith.constant 0 : i32
    %c0_i32_2 = arith.constant 0 : i32
    return %arg0, %arg1, %c0_i32, %c0_i32_0, %c0_i32_1 : i32, i32, i32, i32, i32
  }
  func.func @transform_4(%arg0: i32, %arg1: i32) -> (i32, i32, i32) {
    %c0_i32 = arith.constant 0 : i32
    %c0_i32_0 = arith.constant 0 : i32
    return %arg0, %arg1, %c0_i32 : i32, i32, i32
  }
}

</mosaic_0001>

<bundles_post_ra>
// kernel: tile.13
= control target key start
LH: loop header
LB: loop body
LE: loop exit
PB: predicated region body
PF: predicated region fallthrough
CT: control target
= control target key end

     0   :  { %s22_s0 = inlined_call_operand.vmem [shape: f32[4], index: 0, kind: input, shape index: {}]   ;;  %s23_s1 = inlined_call_operand.vmem [shape: f32[2,4], index: 1, kind: output, shape index: {}]  }
   0x1   :  { %v4_v0 = vld [vmem:[%s22_s0] ss:$0 sm:$0xff] }
   0x2   :  { %5 = vst [vmem:[%s23_s1] sm:$0x3] %v4_v0 }

// kernel: tile.14
= control target key start
LH: loop header
LB: loop body
LE: loop exit
PB: predicated region body
PF: predicated region fallthrough
CT: control target
= control target key end

     0   :  { %vm7_vm0 = vcmask 31744   ;;  %vm13_vm1 = vcmask 64544   ;;  %s39_s0 = inlined_call_operand.vmem [shape: f32[2,4], index: 0, kind: input, shape index: {}]   ;;  %s40_s1 = inlined_call_operand.vmem [shape: f32[1,8], index: 1, kind: output, shape index: {}]  }
   0x1   :  { %v4_v0 = vld [vmem:[%s39_s0] sm:$0x3]  ;;  %s22_s0 = smov 4  }
   0x2   :  { %5 = vst [vmem:[#allocation1] sm:$0x3] %v4_v0 }
   0x9   :  { %v10_v1 = vld [vmem:[#allocation1 + $0x1] sm:$0x1]   ;;  %v6_v2 = vld [vmem:[#allocation1] sm:$0x1]  }
   0xa   :  { %11 = vrot.lane.b32.xlu0 %v10_v1, %s22_s0  ;;  %8 = vst.msk [vmem:[#allocation0] sm:$0x1] %vm7_vm0, %v6_v2  }
  0x7c   :  { %v12_v3 = vpop.permute.xlu0 %11  }
  0x7d   :  { %14 = vst.msk [vmem:[#allocation0] sm:$0x1] %vm13_vm1, %v12_v3  }
  0x84   :  { %v18_v4 = vld [vmem:[#allocation0] sm:$0x1] }
  0x85   :  { %20 = vst [vmem:[%s40_s1] sm:$0x1] %v18_v4 }

// kernel: transition_block_forward.1
= control target key start
LH: loop header
LB: loop body
LE: loop exit
PB: predicated region body
PF: predicated region fallthrough
CT: control target
= control target key end

     0   :  { %s678_s15 = smov 0   ;;  %s680_s16 = smov 0   ;;  %s777_s0 = inlined_call_operand.vmem [shape: f32[1,8], index: 0, kind: input, shape index: {}]   ;;  %s778_s1 = inlined_call_operand.vmem [shape: f32[1,8], index: 1, kind: input, shape index: {}]   ;;  %s779_s2 = inlined_call_operand.vmem [shape: bf16[8,128], index: 2, kind: input, shape index: {}]   ;;  %s780_s3 = inlined_call_operand.vmem [shape: bf16[2,8,2,8,8], index: 3, kind: input, shape index: {}]   ;;  %s781_s4 = inlined_call_operand.vmem [shape: f32[2,64,128], index: 4, kind: output, shape index: {}]  }
   0x1   :  { %s682_s17 = smov 0  }
   0x2 LB: > { %s26_s18 = sadd.s32 1, %s647_s16  ;;  %p532_p0 = scmp.ge.s32.totalorder %s651_s17, 1  ;;  %s651_s17 = sphi %s682_s17, %s14_s17   ;;  %s647_s16 = sphi %s680_s16, %s783_s16   ;;  %s643_s15 = sphi %s678_s15, %s782_s15  }
   0x3   : > { %p28_p1 = scmp.ge.s32.totalorder %s26_s18, 2  ;;  %p184_p2 = scmp.lt.s32.totalorder %s651_s17, 3 }
   0x5   : > { %s785_s18 = smov (%p28_p1, %s26_s18), 0  ;;  %p185_p3 = pnand %p532_p0, %p184_p2 }
   0x6   : > { %v347_v0 = vld [vmem:[%s779_s2] sm:$0xf] (!%p185_p3)  ;;  %vm361_vm0 = vcmask (!%p185_p3), 1043456   ;;  %p220_p4 = scmp.lt.s32.totalorder (!%p185_p3), %s643_s15, 1  ;;  %vm348_vm1 = vcmask (!%p185_p3), 64512  }
   0x7   : > { %188 = sbr.rel (%p185_p3) target bundleno = 258 (0x102), region = 36  ;;  %603 = vmatprep.subr.msk.bf16.mxu0 (!%p185_p3), %vm361_vm0, %v347_v0  ;;  %604 = vmatprep.subr.msk.bf16.mxu1 (!%p185_p3), %vm361_vm0, %v347_v0  ;;  %v363_v1 = vsel (!%p185_p3), %vm361_vm0, %v347_v0, 0  ;;  %v712_v2 = vld [vmem:[%s777_s0] ss:$0 sm:$0xff] (!%p185_p3) }
   0x8   : > { %592 = vmatpush3.bf16.msra.mxu0 (!%p185_p3), %v363_v1  ;;  %602 = vmatpush3.bf16.msra.mxu1 (!%p185_p3), %v363_v1  ;;  %v721_v11 = vld [vmem:[%s778_s1] ss:$0 sm:$0xff] (!%p185_p3) }
   0xe   : > { %s787_s15 = smov (!%p220_p4, %s643_s15), 1 }
   0xf   : > { %s545_s21 = sshll.u32 %s787_s15, 6 }
  0x10   : > { %s707_s24 = scalar_lea.vmem %s780_s3, %s545_s21  ;;  %s238_s5 = scalar_lea.vmem %s781_s4, %s545_s21 }
  0x11   : > { %v548_v3 = vld [vmem:[%s707_s24] sm:$0xff]   ;;  %v579_v4 = vld [vmem:[%s707_s24 + $0x8] sm:$0xff]   ;;  %v580_v32 = vld [vmem:[%s707_s24 + $0x10] sm:$0xff]  }
  0x12   : > { %v582_v5 = vld [vmem:[%s707_s24 + $0x20] sm:$0xff]   ;;  %v549_v6 = vunpack.c.l.bf16 %v548_v3  ;;  %v550_v7 = vunpack.c.h.bf16 %v548_v3  ;;  %v553_v8 = vunpack.c.l.bf16 %v579_v4  ;;  %v554_v9 = vunpack.c.h.bf16 %v579_v4  ;;  %v583_v10 = vld [vmem:[%s707_s24 + $0x28] sm:$0xff]   ;;  %v581_v37 = vld [vmem:[%s707_s24 + $0x18] sm:$0xff]  }
  0x13   : > { %v565_v12 = vunpack.c.l.bf16 %v582_v5  ;;  %v566_v13 = vunpack.c.h.bf16 %v582_v5  ;;  %v569_v14 = vunpack.c.l.bf16 %v583_v10  ;;  %v570_v15 = vunpack.c.h.bf16 %v583_v10  ;;  %v584_v42 = vld [vmem:[%s707_s24 + $0x30] sm:$0xff]   ;;  %v585_v51 = vld [vmem:[%s707_s24 + $0x38] sm:$0xff]  }
  0x14   : > { %v280_v16 = vmul.f32 %v549_v6, %v712_v2  ;;  %v281_v17 = vmul.f32 %v550_v7, %v712_v2  ;;  %v282_v18 = vmul.f32 %v553_v8, %v712_v2  ;;  %v283_v19 = vmul.f32 %v554_v9, %v712_v2 }
  0x15   : > { %v288_v20 = vmul.f32 %v565_v12, %v712_v2  ;;  %v289_v21 = vmul.f32 %v566_v13, %v712_v2  ;;  %v290_v22 = vmul.f32 %v569_v14, %v712_v2  ;;  %v291_v23 = vmul.f32 %v570_v15, %v712_v2 }
  0x16   : > { %v303_v24 = vadd.f32 %v721_v11, %v280_v16  ;;  %v304_v25 = vadd.f32 %v721_v11, %v281_v17  ;;  %v305_v26 = vadd.f32 %v721_v11, %v282_v18  ;;  %v306_v27 = vadd.f32 %v721_v11, %v283_v19 }
  0x17   : > { %v311_v28 = vadd.f32 %v721_v11, %v288_v20  ;;  %v312_v29 = vadd.f32 %v721_v11, %v289_v21  ;;  %v313_v30 = vadd.f32 %v721_v11, %v290_v22  ;;  %v314_v31 = vadd.f32 %v721_v11, %v291_v23 }
  0x18   : > { %v319_v33 = vmax.f32 %v303_v24, 0.0  ;;  %v320_v34 = vmax.f32 %v304_v25, 0.0  ;;  %v321_v35 = vmax.f32 %v305_v26, 0.0  ;;  %v322_v36 = vmax.f32 %v306_v27, 0.0 }
  0x19   : > { %v327_v38 = vmax.f32 %v311_v28, 0.0  ;;  %v328_v39 = vmax.f32 %v312_v29, 0.0  ;;  %v329_v40 = vmax.f32 %v313_v30, 0.0  ;;  %v330_v41 = vmax.f32 %v314_v31, 0.0 }
  0x1a   : > { %v335_v43 = vadd.f32 %v320_v34, %v319_v33  ;;  %v336_v44 = vadd.f32 %v322_v36, %v321_v35  ;;  %v557_v45 = vunpack.c.l.bf16 %v580_v32  ;;  %v558_v46 = vunpack.c.h.bf16 %v580_v32 }
  0x1b   : > { %v339_v47 = vadd.f32 %v328_v39, %v327_v38  ;;  %v340_v48 = vadd.f32 %v330_v41, %v329_v40  ;;  %v561_v49 = vunpack.c.l.bf16 %v581_v37  ;;  %v562_v50 = vunpack.c.h.bf16 %v581_v37 }
  0x1c   : > { %v343_v52 = vpack.c.bf16 %v336_v44, %v335_v43  ;;  %v284_v53 = vmul.f32 %v557_v45, %v712_v2  ;;  %v285_v54 = vmul.f32 %v558_v46, %v712_v2  ;;  %v573_v55 = vunpack.c.l.bf16 %v584_v42 }
  0x1d   : > { %v345_v56 = vpack.c.bf16 %v340_v48, %v339_v47  ;;  %v286_v57 = vmul.f32 %v561_v49, %v712_v2  ;;  %v287_v58 = vmul.f32 %v562_v50, %v712_v2  ;;  %v574_v59 = vunpack.c.h.bf16 %v584_v42 }
  0x1e   : > { %593 = vmatprep.mubr.msk.bf16.mxu0 %vm348_vm1, %v343_v52  ;;  %v307_v60 = vadd.f32 %v721_v11, %v284_v53  ;;  %v308_v61 = vadd.f32 %v721_v11, %v285_v54  ;;  %v577_v62 = vunpack.c.l.bf16 %v585_v51  ;;  %v578_v63 = vunpack.c.h.bf16 %v585_v51 }
  0x1f   : > { %597 = vmatprep.mubr.msk.bf16.mxu1 %vm348_vm1, %v345_v56  ;;  %v309_v0 = vadd.f32 %v721_v11, %v286_v57  ;;  %v310_v1 = vadd.f32 %v721_v11, %v287_v58  ;;  %v292_v3 = vmul.f32 %v573_v55, %v712_v2  ;;  %v293_v4 = vmul.f32 %v574_v59, %v712_v2 }
  0x20   : > { %v323_v5 = vmax.f32 %v307_v60, 0.0  ;;  %v324_v6 = vmax.f32 %v308_v61, 0.0  ;;  %v294_v7 = vmul.f32 %v577_v62, %v712_v2  ;;  %v295_v8 = vmul.f32 %v578_v63, %v712_v2 }
  0x21   : > { %v325_v9 = vmax.f32 %v309_v0, 0.0  ;;  %v326_v10 = vmax.f32 %v310_v1, 0.0  ;;  %v315_v12 = vadd.f32 %v721_v11, %v292_v3  ;;  %v316_v13 = vadd.f32 %v721_v11, %v293_v4 }
  0x22   : > { %v337_v14 = vadd.f32 %v324_v6, %v323_v5  ;;  %v317_v15 = vadd.f32 %v721_v11, %v294_v7  ;;  %v318_v16 = vadd.f32 %v721_v11, %v295_v8 }
  0x23   : > { %v338_v17 = vadd.f32 %v326_v10, %v325_v9  ;;  %v331_v18 = vmax.f32 %v315_v12, 0.0  ;;  %v332_v19 = vmax.f32 %v316_v13, 0.0 }
  0x24   : > { %v333_v20 = vmax.f32 %v317_v15, 0.0  ;;  %v334_v21 = vmax.f32 %v318_v16, 0.0 }
  0x25   : > { %v344_v22 = vpack.c.bf16 %v338_v17, %v337_v14  ;;  %v341_v23 = vadd.f32 %v332_v19, %v331_v18 }
  0x26   : > { %v342_v2 = vadd.f32 %v334_v21, %v333_v20 }
  0x27   : > { %594 = vmatmul.mubr.msk.bf16.vlgmr.msra.gmra.mrb[0].mxu0 %vm348_vm1, %v344_v22 }
  0x28   : > { %v346_v24 = vpack.c.bf16 %v342_v2, %v341_v23 }
  0x2a   : > { %598 = vmatmul.mubr.msk.bf16.vlgmr.msra.gmra.mrb[0].mxu1 %vm348_vm1, %v346_v24 }
  0xfa   : > { %v595_v25 = vpop.f32.mrb[0].mxu0 }
  0xfb   : > { %432 = vst [vmem:[%s238_s5 + $0x10] sm:$0xff] %v595_v25  ;;  %v399_v11 = vpop.f32.mrb[1].mxu0 }
  0xfc   : > { %430 = vst [vmem:[%s238_s5] sm:$0xff] %v399_v11  ;;  %v596_v26 = vpop.f32.mrb[2].mxu0 }
  0xfd   : > { %v599_v27 = vpop.f32.mrb[0].mxu1  ;;  %433 = vst [vmem:[%s238_s5 + $0x18] sm:$0xff] %v596_v26  ;;  %v402_v28 = vpop.f32.mrb[3].mxu0 }
  0xfe   : > { %436 = vst [vmem:[%s238_s5 + $0x30] sm:$0xff] %v599_v27  ;;  %v415_v29 = vpop.f32.mrb[1].mxu1  ;;  %431 = vst [vmem:[%s238_s5 + $0x8] sm:$0xff] %v402_v28 }
  0xff   : > { %434 = vst [vmem:[%s238_s5 + $0x20] sm:$0xff] %v415_v29  ;;  %v600_v30 = vpop.f32.mrb[2].mxu1 }
 0x100   : > { %437 = vst [vmem:[%s238_s5 + $0x38] sm:$0xff] %v600_v30  ;;  %v418_v31 = vpop.f32.mrb[3].mxu1 }
 0x101   : > { %435 = vst [vmem:[%s238_s5 + $0x28] sm:$0xff] %v418_v31 }
 0x102 PF: > { %s14_s17 = sadd.s32 1, %s651_s17   ;;  %s782_s15 = smov %s647_s16 }
 0x103   : > { %p11_p5 = scmp.ge.s32.totalorder %s14_s17, 4   ;;  %s783_s16 = smov %s785_s18 }
 0x105   :  { %13 = sbr.rel (!%p11_p5) target bundleno = 2 (0x2), region = 66 }

</bundles_post_ra>
